<compile_context>
chip_gen: v6e
topology: v6e:2x2x1
jax: 0.10.0
libtpu: 0.0.40
codegen_flags: <defaults>
</compile_context>

<pallas_src>
import functools

import jax
import jax.numpy as jnp
from jax.experimental import pallas as pl
from jax.experimental.pallas import tpu as pltpu


# ----------------------------------------------------------------------------
# Kernel
# ----------------------------------------------------------------------------
def _unpool_kernel(x_ref, s_ref, o_ref):
    # x_ref: (TR, TW)        input tile (lane dim = TW)
    # s_ref: (TW, TW*s)      0/1 lane-scatter matrix, S[w, w*s] = 1
    # o_ref: (TR, s, TW*s)   output tile (lane dim = TW*s)
    o_ref[...] = jnp.zeros_like(o_ref)  # the s*s - 1 zero taps (and plane 0 init)
    plane0 = jnp.dot(x_ref[...], s_ref[...], preferred_element_type=jnp.float32)
    o_ref[:, 0:1, :] = plane0[:, None, :].astype(o_ref.dtype)


# ----------------------------------------------------------------------------
# Tiling helpers
# ----------------------------------------------------------------------------
_VMEM_TILE_BUDGET = 16 << 20  # padded, double-buffered in+out working set
_VMEM_LIMIT = 32 << 20        # explicit scoped-VMEM request (ok on v5e/v6e/v7x)
_TW_MAX = 512                 # cap on W tile -> caps scatter-matrix size


def _round_up(n, m):
    return ((n + m - 1) // m) * m


def _cdiv(a, b):
    return (a + b - 1) // b


def _choose_w_tile(w):
    if w <= _TW_MAX:
        return w
    # Only tile W with an exactly-dividing, 128-aligned width (keeps every
    # input block fully in-bounds so the matmul never touches padding).
    for tw in (512, 384, 256, 128):
        if w % tw == 0:
            return tw
    return w  # fallback: single (larger) tile; still correct


def _choose_row_tile(rows, tw, s, itemsize):
    if rows <= 8:
        return rows  # block equals full dim -> always legal
    lane_out = _round_up(tw * s, 128)
    sub_out = _round_up(s, 8)
    lane_in = _round_up(tw, 128)
    # Padded VMEM bytes per row of the block, x2 for double buffering.
    per_row = 2 * (sub_out * lane_out + lane_in) * itemsize
    tr = max(8, (_VMEM_TILE_BUDGET // per_row) // 8 * 8)
    # Keep >= ~8 row steps when rows allow: >=2 steps per TC on v7x megacore
    # plus DMA/compute overlap headroom.
    tr = min(tr, max(8, _round_up(_cdiv(rows, 8), 8)))
    tr = min(tr, _round_up(rows, 8))
    return tr


# ----------------------------------------------------------------------------
# Wrapper
# ----------------------------------------------------------------------------
@functools.partial(jax.jit, static_argnames=("stride",))
def unpool(x, stride=2):
    """PyTorch Unpool.forward: x is NCHW, output is (B, C, H*stride, W*stride)."""
    assert x.ndim == 4
    B, C, H, W = x.shape
    s = int(stride)
    rows = B * C * H

    # Free (contiguous) reshape: lane-dense input view.
    x2 = x.reshape(rows, W)

    tw = _choose_w_tile(W)
    tr = _choose_row_tile(rows, tw, s, x.dtype.itemsize)
    n_r = _cdiv(rows, tr)
    n_w = _cdiv(W, tw)

    # 0/1 scatter matrix: input column w -> output lane w*s (within a W tile).
    scat = (
        jnp.zeros((tw, tw * s), x.dtype)
        .at[jnp.arange(tw), jnp.arange(tw) * s]
        .set(1)
    )

    out3 = pl.pallas_call(
        _unpool_kernel,
        out_shape=jax.ShapeDtypeStruct((rows, s, W * s), x.dtype),
        grid=(n_r, n_w),
        in_specs=[
            pl.BlockSpec((tr, tw), lambda r, w: (r, w)),
            pl.BlockSpec((tw, tw * s), lambda r, w: (0, 0)),
        ],
        out_specs=pl.BlockSpec((tr, s, tw * s), lambda r, w: (r, 0, w)),
        compiler_params=pltpu.CompilerParams(
            dimension_semantics=("parallel", "parallel"),
            vmem_limit_bytes=_VMEM_LIMIT,
        ),
    )(x2, scat)

    # Free reshape back to NCHW: (B*C*H, s, W*s) -> (B, C, H*s, W*s).
    return out3.reshape(B, C, H * s, W * s)


# ----------------------------------------------------------------------------
# Self-test
# ----------------------------------------------------------------------------
if __name__ == "__main__":
    key = jax.random.PRNGKey(0)
    # Small NCHW input consistent with the module: batch=2, channels=4, 16x16.
    x = jax.random.normal(key, (2, 4, 16, 16), jnp.float32)

    y = unpool(x, stride=2)
    jax.block_until_ready(y)

    assert y.shape == (2, 4, 32, 32), y.shape
    # Reference: conv_transpose2d with a (0,0)-delta depthwise kernel and
    # stride 2 is exactly zero-stuffing by the stride (for finite inputs).
    ref = jnp.zeros_like(y).at[:, :, ::2, ::2].set(x)
    assert bool(jnp.array_equal(y, ref)), "mismatch vs zero-stuffing reference"
    assert bool(jnp.all(jnp.isfinite(y)))
    print("KERNEL_OK")
</pallas_src>

<mosaic_0001>
module attributes {stable_mosaic.version = 11 : i64} {
  func.func @_unpool_kernel(%arg0: i32, %arg1: i32, %arg2: memref<16x16xf32, #tpu.memory_space<vmem>>, %arg3: memref<16x32xf32, #tpu.memory_space<vmem>>, %arg4: memref<16x2x32xf32, #tpu.memory_space<vmem>>) attributes {dimension_semantics = [#tpu.dimension_semantics<parallel>, #tpu.dimension_semantics<parallel>], iteration_bounds = array<i64: 8, 1>, scalar_prefetch = 0 : i64, scratch_operands = 0 : i64, tpu.core_type = #tpu.core_type<tc>, window_params = [{transform_indices = @transform_0, window_bounds = array<i64: 16, 16>}, {pipeline_mode = #tpu.pipeline_mode<synchronous>, transform_indices = @transform_1, window_bounds = array<i64: 16, 32>}, {transform_indices = @transform_2, window_bounds = array<i64: 16, 2, 32>}]} {
    %cst = arith.constant 0.000000e+00 : f32
    %0 = vector.broadcast %cst : f32 to vector<16x2x32xf32>
    %c0 = arith.constant 0 : index
    %c0_0 = arith.constant 0 : index
    %c0_1 = arith.constant 0 : index
    %1 = vector.load %arg4[%c0, %c0_0, %c0_1] : memref<16x2x32xf32, #tpu.memory_space<vmem>>, vector<16x2x32xf32>
    tpu.vector_store %arg4[%c0, %c0_0, %c0_1], %0 {strides = array<i32>} : memref<16x2x32xf32, #tpu.memory_space<vmem>>, vector<16x2x32xf32>,
    %c0_2 = arith.constant 0 : index
    %c0_3 = arith.constant 0 : index
    %2 = vector.load %arg2[%c0_2, %c0_3] : memref<16x16xf32, #tpu.memory_space<vmem>>, vector<16x16xf32>
    %c0_4 = arith.constant 0 : index
    %c0_5 = arith.constant 0 : index
    %3 = vector.load %arg3[%c0_4, %c0_5] : memref<16x32xf32, #tpu.memory_space<vmem>>, vector<16x32xf32>
    %cst_6 = arith.constant dense<0.000000e+00> : vector<16x32xf32>
    %4 = tpu.matmul %2, %3, %cst_6 {dimension_numbers = #tpu.dot_dimension_numbers<[1], [0], [0], [1], [0, 0, 1, 1], [], []>} : vector<16x16xf32>, vector<16x32xf32>, vector<16x32xf32> -> vector<16x32xf32>
    %5 = vector.shape_cast %4 : vector<16x32xf32> to vector<16x1x32xf32>
    %c0_7 = arith.constant 0 : index
    %c0_8 = arith.constant 0 : index
    %c0_9 = arith.constant 0 : index
    %6 = vector.load %arg4[%c0_7, %c0_8, %c0_9] : memref<16x2x32xf32, #tpu.memory_space<vmem>>, vector<16x1x32xf32>
    tpu.vector_store %arg4[%c0_7, %c0_8, %c0_9], %5 {strides = array<i32>} : memref<16x2x32xf32, #tpu.memory_space<vmem>>, vector<16x1x32xf32>,
    return
  }
  func.func @transform_0(%arg0: i32, %arg1: i32) -> (i32, i32) {
    %c0_i32 = arith.constant 0 : i32
    return %arg0, %arg1 : i32, i32
  }
  func.func @transform_1(%arg0: i32, %arg1: i32) -> (i32, i32) {
    %c0_i32 = arith.constant 0 : i32
    %c0_i32_0 = arith.constant 0 : i32
    %c0_i32_1 = arith.constant 0 : i32
    return %c0_i32, %c0_i32_0 : i32, i32
  }
  func.func @transform_2(%arg0: i32, %arg1: i32) -> (i32, i32, i32) {
    %c0_i32 = arith.constant 0 : i32
    %c0_i32_0 = arith.constant 0 : i32
    return %arg0, %c0_i32, %arg1 : i32, i32, i32
  }
}

</mosaic_0001>

<bundles_post_ra>
// kernel: unpool.1
= control target key start
LH: loop header
LB: loop body
LE: loop exit
PB: predicated region body
PF: predicated region fallthrough
CT: control target
= control target key end

     0   :  { %7 = vsyncpa [#allocation3], 0  ;;  %s870_s0 = inlined_call_operand.vmem [shape: f32[128,16], index: 0, kind: input, shape index: {}]   ;;  %s871_s1 = inlined_call_operand.vmem [shape: f32[16,32], index: 1, kind: input, shape index: {}]   ;;  %s872_s2 = inlined_call_operand.hbm [shape: f32[128,2,32], index: 2, kind: output, shape index: {}]  }
   0x1   :  { %9 = vsyncpa [#allocation3 + $0x1], 0  ;;  %s680_s9 = smov 0   ;;  %s682_s10 = smov 0  }
   0x2   :  { %s684_s11 = smov 0   ;;  %s686_s12 = smov 0  }
   0x3   :  { %s688_s13 = smov 0   ;;  %s690_s14 = smov 0  }
   0x4 LB: > { %s496_s15 = sadd.s32 4294967295, %s658_s14   ;;  %s497_s16 = sadd.s32 4294967294, %s658_s14   ;;  %s658_s14 = sphi %s690_s14, %s15_s14   ;;  %s654_s13 = sphi %s688_s13, %s879_s13   ;;  %s650_s12 = sphi %s686_s12, %s878_s12   ;;  %s646_s11 = sphi %s684_s11, %s877_s11   ;;  %s642_s10 = sphi %s682_s10, %s876_s10   ;;  %s638_s9 = sphi %s680_s9, %s875_s9  }
   0x5   : > { %s27_s17 = sadd.s32 1, %s654_s13  ;;  %s85_s18 = sadd.s32 1, %s646_s11 }
   0x6   : > { %p29_p0 = scmp.ge.s32.totalorder %s27_s17, 8  ;;  %p95_p1 = scmp.ne.s32.totalorder %s646_s11, %s642_s10 }
   0x7   : > { %p96_p2 = scmp.eq.s32.totalorder %s496_s15, 7  ;;  %p101_p3 = scmp.ne.s32.totalorder %s642_s10, %s638_s9 }
   0x8   : > { %s881_s17 = smov (%p29_p0, %s27_s17), 0  ;;  %p102_p5 = scmp.eq.s32.totalorder %s497_s16, 7 }
   0x9   : > { %p720_p4 = por %p96_p2, %p95_p1  ;;  %s80_s20 = ssub.s32 %s654_s13, %s881_s17 }
   0xa   : > { %p500_p6 = scmp.ge.s32.totalorder %s658_s14, 1  ;;  %p83_p7 = scmp.eq.s32.totalorder %s80_s20, 0 }
   0xb   : > { %p727_p8 = por %p102_p5, %p101_p3  ;;  %p135_p9 = scmp.lt.s32.totalorder %s658_s14, 9 }
   0xc   : > { %s733_s22 = scalar_select %p83_p7, %s646_s11, %s85_s18  }
   0xd   : > { %p136_p10 = pnand %p500_p6, %p135_p9 }
   0xe   : > { %s502_s27 = sshll.u32 (!%p136_p10), %s650_s12, 1  ;;  %s157_s28 = sand.u32 (!%p136_p10), 1, %s642_s10  }
   0xf   : > { %139 = sbr.rel (%p136_p10) target bundleno = 245 (0xf5), region = 28  ;;  %p161_p11 = scmp.lt.s32.totalorder (!%p136_p10), %s502_s27, 15 }
  0x10   : > { %s501_s29 = sshll.u32 (!%p136_p10), %s157_s28, 5  ;;  %s511_s7 = sshll.u32 (!%p136_p10), %s650_s12, 9 }
  0x11   : > { %s745_s30 = scalar_lea.vmem (!%p136_p10), [#allocation2], %s501_s29  ;;  %s811_s16 = scalar_lea.hbm (!%p136_p10), %s872_s2, %s511_s7 }
  0x12   : > { %s421_s8 = sshll.u32 (!%p136_p10), %s745_s30, 4  ;;  %s825_s18 = scalar_lea.sflag (!%p136_p10), [#allocation3], %s157_s28  ;;  %s813_s8 = int_to_ptr.vmem [resolvable:$true] %s421_s8 }
  0x13   : > { %s582_s20 = scalar_lea.vmem (!%p136_p10), %s813_s8, 512  ;;  %s662_s23 = smov (!%p136_p10), [#allocation2]  }
  0x14   : > { %v190_v0 = vld [vmem:[%s871_s1 + $0x8] sm:$0xff]  ;;  %v189_v1 = vld [vmem:[%s871_s1] sm:$0xff]  ;;  %vm170_vm0 = vcmask 254976   ;;  %s883_s27 = smov (!%p161_p11, %s502_s27), 15  ;;  %v660_v2 = vmov 0.0   ;;  %vm191_vm1 = vcmask 130048   ;;  %v279_v7 = vlaneseq  ;;  %p583_p12 = scmp.ne.s32.totalorder %s813_s8, %s582_s20 }
  0x15   : > { %516 = vmatprep.subr.mxu0 %v190_v0  ;;  %179 = vst.msk [vmem:[%s745_s30 + $0x10] sm:$0x3] %vm170_vm0, %v660_v2  ;;  %180 = vst.msk [vmem:[%s745_s30 + $0x12] sm:$0x3] %vm170_vm0, %v660_v2  ;;  %s503_s3 = sshll.u32 %s883_s27, 3  ;;  %vm389_vm2 = vcmask 253952  }
  0x16   : > { %517 = vmatpush3.msra.mxu0 %v190_v0  ;;  %181 = vst.msk [vmem:[%s745_s30 + $0x14] sm:$0x3] %vm170_vm0, %v660_v2  ;;  %182 = vst.msk [vmem:[%s745_s30 + $0x16] sm:$0x3] %vm170_vm0, %v660_v2  ;;  %s167_s6 = scalar_lea.vmem %s870_s0, %s503_s3  ;;  %v661_v5 = vmov 1966171168   ;;  %p584_p13 = pnand %p583_p12, %p720_p4 }
  0x17   : > { %518 = vmatprep.subr.mxu0 %v189_v1  ;;  %183 = vst.msk [vmem:[%s745_s30 + $0x18] sm:$0x3] %vm170_vm0, %v660_v2  ;;  %184 = vst.msk [vmem:[%s745_s30 + $0x1a] sm:$0x3] %vm170_vm0, %v660_v2  ;;  %v187_v3 = vld [vmem:[%s167_s6] sm:$0xff]  ;;  %v188_v4 = vld [vmem:[%s167_s6 + $0x8] sm:$0xff]  ;;  %v277_v6 = vunpack.c.l.s4 %v661_v5 }
  0x18   : > { %185 = vst.msk [vmem:[%s745_s30 + $0x1c] sm:$0x3] %vm170_vm0, %v660_v2  ;;  %186 = vst.msk [vmem:[%s745_s30 + $0x1e] sm:$0x3] %vm170_vm0, %v660_v2  ;;  %519 = vmatpush3.msra.mxu0 %v189_v1  ;;  %520 = vmatprep.mubr.msk.f32.mxu0 %vm191_vm1, %v187_v3  ;;  %v280_v9 = vshrl.u32 %v279_v7, 7  ;;  %p585_p0 = pneg %p584_p13  ;;  %s586_s24 = sshll.u32 %s662_s23, 4  ;;  %s587_s24 = int_to_ptr.vmem [resolvable:$false] %s586_s24 }
  0x19   : > { %171 = vst.msk [vmem:[%s745_s30] sm:$0x3] %vm170_vm0, %v660_v2  ;;  %172 = vst.msk [vmem:[%s745_s30 + $0x2] sm:$0x3] %vm170_vm0, %v660_v2  ;;  %521 = vmatmul.mubr.msk.f32.vlgmr.msra.gmra.mxu0 %vm191_vm1, %v188_v4  ;;  %v278_v8 = vunpack.c.0.s8 %v277_v6  ;;  %s588_s25 = scalar_lea.vmem %s587_s24, 1024  ;;  %p589_p1 = scmp.lt.s32.totalorder %s813_s8, %s587_s24 }
  0x1a   : > { %173 = vst.msk [vmem:[%s745_s30 + $0x4] sm:$0x3] %vm170_vm0, %v660_v2  ;;  %174 = vst.msk [vmem:[%s745_s30 + $0x6] sm:$0x3] %vm170_vm0, %v660_v2  ;;  %p590_p2 = scmp.lt.s32.totalorder %s588_s25, %s582_s20 }
  0x1b   : > { %175 = vst.msk [vmem:[%s745_s30 + $0x8] sm:$0x3] %vm170_vm0, %v660_v2  ;;  %176 = vst.msk [vmem:[%s745_s30 + $0xa] sm:$0x3] %vm170_vm0, %v660_v2  ;;  %v281_v10 = vsub.s32 %v278_v8, %v280_v9 }
  0x1c   : > { %177 = vst.msk [vmem:[%s745_s30 + $0xc] sm:$0x3] %vm170_vm0, %v660_v2  ;;  %178 = vst.msk [vmem:[%s745_s30 + $0xe] sm:$0x3] %vm170_vm0, %v660_v2  ;;  %p591_p3 = por %p590_p2, %p589_p1 }
  0x1e   : > { %p592_p5 = pnand %p591_p3, %p585_p0 }
  0xd9   : > { %v522_v11 = vpop.f32.mrf.mxu0 }
  0xda   : > { %v324_v12 = vcombine.high %v522_v11, %v522_v11  ;;  %v331_v13 = vrot.slane %v522_v11, %v281_v10 }
  0xdb   : > { %v264_v14 = vpop.f32.mrf.mxu0 }
  0xdc   : > { %v338_v15 = vrot.slane %v324_v12, %v281_v10  ;;  %v339_v16 = vcombine.high %v331_v13, %v331_v13  ;;  %v347_v17 = vrot.slane %v331_v13, %v281_v10  ;;  %v275_v18 = vcombine.high %v264_v14, %v264_v14 }
  0xdd   : > { %v282_v19 = vrot.slane %v264_v14, %v281_v10 }
  0xde   : > { %v340_v20 = vcombine.high %v338_v15, %v338_v15  ;;  %v354_v21 = vrot.slane %v338_v15, %v281_v10  ;;  %v361_v22 = vrot.slane %v339_v16, %v281_v10  ;;  %v369_v23 = vcombine.high %v347_v17, %v347_v17  ;;  %398 = vst.msk [vmem:[%s745_s30 + $0x10] sm:$0x1] %vm389_vm2, %v347_v17 }
  0xdf   : > { %v289_v24 = vrot.slane %v275_v18, %v281_v10  ;;  %v290_v25 = vcombine.high %v282_v19, %v282_v19  ;;  %v298_v26 = vrot.slane %v282_v19, %v281_v10 }
  0xe0   : > { %v368_v27 = vrot.slane %v340_v20, %v281_v10  ;;  %v370_v28 = vcombine.high %v354_v21, %v354_v21  ;;  %v371_v29 = vcombine.high %v361_v22, %v361_v22  ;;  %399 = vst.msk [vmem:[%s745_s30 + $0x12] sm:$0x1] %vm389_vm2, %v361_v22  ;;  %400 = vst.msk [vmem:[%s745_s30 + $0x14] sm:$0x1] %vm389_vm2, %v369_v23 }
  0xe1   : > { %402 = vst.msk [vmem:[%s745_s30 + $0x18] sm:$0x1] %vm389_vm2, %v354_v21  ;;  %v291_v30 = vcombine.high %v289_v24, %v289_v24  ;;  %v305_v31 = vrot.slane %v289_v24, %v281_v10  ;;  %v312_v32 = vrot.slane %v290_v25, %v281_v10  ;;  %v320_v33 = vcombine.high %v298_v26, %v298_v26 }
  0xe2   : > { %390 = vst.msk [vmem:[%s745_s30] sm:$0x1] %vm389_vm2, %v298_v26  ;;  %v372_v34 = vcombine.high %v368_v27, %v368_v27  ;;  %401 = vst.msk [vmem:[%s745_s30 + $0x16] sm:$0x1] %vm389_vm2, %v371_v29 }
  0xe3   : > { %403 = vst.msk [vmem:[%s745_s30 + $0x1a] sm:$0x1] %vm389_vm2, %v368_v27  ;;  %404 = vst.msk [vmem:[%s745_s30 + $0x1c] sm:$0x1] %vm389_vm2, %v370_v28  ;;  %v319_v35 = vrot.slane %v291_v30, %v281_v10  ;;  %v321_v36 = vcombine.high %v305_v31, %v305_v31  ;;  %v322_v37 = vcombine.high %v312_v32, %v312_v32 }
  0xe4   : > { %391 = vst.msk [vmem:[%s745_s30 + $0x2] sm:$0x1] %vm389_vm2, %v312_v32  ;;  %392 = vst.msk [vmem:[%s745_s30 + $0x4] sm:$0x1] %vm389_vm2, %v320_v33 }
  0xe5   : > { %394 = vst.msk [vmem:[%s745_s30 + $0x8] sm:$0x1] %vm389_vm2, %v305_v31  ;;  %405 = vst.msk [vmem:[%s745_s30 + $0x1e] sm:$0x1] %vm389_vm2, %v372_v34  ;;  %v323_v38 = vcombine.high %v319_v35, %v319_v35 }
  0xe6   : > { %393 = vst.msk [vmem:[%s745_s30 + $0x6] sm:$0x1] %vm389_vm2, %v322_v37  ;;  %395 = vst.msk [vmem:[%s745_s30 + $0xa] sm:$0x1] %vm389_vm2, %v319_v35 }
  0xe7   : > { %396 = vst.msk [vmem:[%s745_s30 + $0xc] sm:$0x1] %vm389_vm2, %v321_v36  ;;  %397 = vst.msk [vmem:[%s745_s30 + $0xe] sm:$0x1] %vm389_vm2, %v323_v38 }
  0xe8   : > { %595 = shalt.err (!%p592_p5)
}
  0xe9   : > { %s596_s26 = scalar_lea.hbm %s811_s16, 512  ;;  %s600_s29 = scalar_lea.hbm %s872_s2, 4096 }
  0xea   : > { %p597_p6 = scmp.ne.s32.totalorder %s811_s16, %s596_s26  ;;  %p601_p10 = scmp.lt.s32.totalorder %s811_s16, %s872_s2 }
  0xeb   : > { %p602_p11 = scmp.lt.s32.totalorder %s600_s29, %s596_s26 }
  0xec   : > { %p598_p7 = pnand %p597_p6, %p720_p4 }
  0xed   : > { %p603_p12 = por %p602_p11, %p601_p10 }
  0xee   : > { %p599_p9 = pneg %p598_p7 }
  0xf0   : > { %p604_p13 = pnand %p603_p12, %p599_p9 }
  0xf2   : > { %607 = shalt.err (!%p604_p13)
}
  0xf3   : > { %s663_s4 = smov 32   ;;  %s664_s5 = smov 2  }
  0xf4   : > { %523 = dma.vmem_to_hbm [thread:$0]  (%p720_p4), %s813_s8, 512, %s811_s16, %s825_s18, %s663_s4, %s663_s4, %s664_s5  }
  0xf5 PF: > { %p529_p0 = scmp.ge.s32.totalorder %s658_s14, 2  ;;  %s436_s6 = sand.u32 1, %s638_s9  }
  0xf6   : > { %s437_s7 = scalar_lea.sflag [#allocation3], %s436_s6 }
  0xf7   : > { %p526_p1 = pnand %p529_p0, %p727_p8 }
  0xf9   : > { %p527_p2 = pneg %p526_p1 }
  0xfb   : > { %633 = dma.done.wait (%p527_p2), %s437_s7, 512  }
  0xfc   : > { %635 = vsyncadd (%p527_p2), %s437_s7, 4294966784  ;;  %s15_s14 = sadd.s32 1, %s658_s14   ;;  %s875_s9 = smov %s642_s10 }
  0xfd   : > { %p12_p3 = scmp.ge.s32.totalorder %s15_s14, 10   ;;  %s876_s10 = smov %s646_s11 }
  0xfe   : > { %s877_s11 = smov %s733_s22  ;;  %s878_s12 = smov %s654_s13 }
  0xff   : > { %s879_s13 = smov %s881_s17  ;;  %14 = sbr.rel (!%p12_p3) target bundleno = 4 (0x4), region = 63 }
 0x104   :  { %442 = vsyncpa [#allocation3], 1 }
 0x105   :  { %444 = vsyncpa [#allocation3 + $0x1], 1 }

</bundles_post_ra>
